<compile_context>
chip_gen: v7x
topology: tpu7x:2x2x1
jax: 0.10.0
libtpu: 0.0.40
codegen_flags: <defaults>
</compile_context>

<pallas_src>
import jax
import jax.numpy as jnp
import numpy as np
from jax import lax
from jax.experimental import pallas as pl
from jax.experimental.pallas import tpu as pltpu

# ---- problem sizes (small, consistent with the module) ----------------------
B, S, D, H = 2, 8, 32, 4      # batch, seq, d_model, num_heads
DK = D // H                   # head dim (d_k = d_v)
DFF = 4 * D                   # FFN hidden
EPS = 1e-5                    # nn.LayerNorm default eps
SQRT_DK = float(DK) ** 0.5
INV_SQRT_DK = 1.0 / SQRT_DK
NEG = -1e30                   # finite "-inf" for cross-head softmax entries

# The Gram-frame attention below relies on the reference's quirky
# permute(0,2,1).reshape(B,S,H,dk).permute(0,2,1,3) head split, which for
# d_k == seq_len reduces to Qh[b,h,i,k] = Q[b,k,i*H+h].
# TODO(synk): for shapes with d_k != seq_len the permute-before-reshape does
# not factor this way; a wrapper-side permutation fallback would be required.
assert D % H == 0 and D == H * S and DK == S
assert DFF >= 3 * D           # bias packing below

VMEM = pltpu.MemorySpace.VMEM

# dot_general dimension numbers (same convention as the official flash kernels)
TN_DIMS = (((0,), (0,)), ((), ()))   # lhs^T @ rhs   (contract both dim 0)
NT_DIMS = (((1,), (1,)), ((), ()))   # lhs @ rhs^T   (contract both dim 1)


# ---------------------- host-built constant masks -----------------------------
def _build_masks_np():
    d = np.arange(D)
    same_head = (d[:, None] % H) == (d[None, :] % H)                       # (D, D)
    addmask = np.where(same_head, 0.0, NEG).astype(np.float32)             # softmax mask
    hp = ((d[None, :] // DK) == (d[:, None] % H)).astype(np.float32)       # head placement
    rsel = ((d[None, :] // H) == np.arange(S)[:, None]).astype(np.float32) # (S, D) row groups
    return np.concatenate([addmask, hp, rsel], axis=0)                     # (2D+S, D)


_MASKS_NP = _build_masks_np()


# ------------------------------ fused kernel ---------------------------------
def encoder_layer_kernel(x_ref, w_ref, w1_ref, w2_ref, vecs_ref, masks_ref,
                         qscale_ref, out_ref):
    x = x_ref[...]                                      # (B*S, D)

    # packed 1-row vectors, one (8, DFF) slab -- see pack order in _pack_params
    b1   = vecs_ref[0:1, 0:DFF]
    bqkv = vecs_ref[1:2, 0:3 * D]
    bo   = vecs_ref[2:3, 0:D]
    b2   = vecs_ref[3:4, 0:D]
    g1   = vecs_ref[4:5, 0:D]
    be1  = vecs_ref[5:6, 0:D]
    g2   = vecs_ref[6:7, 0:D]
    be2  = vecs_ref[7:8, 0:D]

    # host-built constants, packed into one (2D+S, D) operand
    addmask = masks_ref[0:D, :]                         # 0 (same head) / -1e30
    hp      = masks_ref[D:2 * D, :]                     # head-placement mask
    rsel    = masks_ref[2 * D:2 * D + S, :]             # (S, D) query-row selector

    wfull = w_ref[...]                                  # (D, 4D) lane-dense slab

    # ---- fused Q|K|V projection: one MXU pass, sliced in vregs ----
    proj = jnp.dot(x, wfull[:, 0:3 * D],
                   preferred_element_type=jnp.float32) + bqkv            # (B*S, 3D)

    # ---- per-batch attention in the Gram frame (all heads at once).
    #      Both batches' matmuls are issued back-to-back so MXU result latency
    #      hides under the softmax VPU/EUP work.
    grams, wv = [], []
    for b in range(B):
        r0 = b * S
        # padded-query scale (0 or 1/sqrt(d_k)) folded into Q's columns
        q_b = proj[r0:r0 + S, 0:D] * qscale_ref[b:b + 1, :]              # (S, D)
        k_b = proj[r0:r0 + S, D:2 * D]                                   # (S, D)
        v_b = proj[r0:r0 + S, 2 * D:3 * D]                               # (S, D)
        # Gram over the sequence axis: G[d1, d2] = sum_s q[s, d1] * k[s, d2]
        grams.append(lax.dot_general(q_b, k_b, TN_DIMS,
                                     preferred_element_type=jnp.float32))  # (D, D)
        # sublane-tiled V: row c of wv maps to v_b row (c % DK)  (aligned concat)
        wv.append(jnp.concatenate([v_b] * H, axis=0))                    # (D, D)

    probs = []
    for b in range(B):
        s = grams[b] + addmask                          # cross-head -> -1e30
        m = jnp.max(s, axis=-1, keepdims=True)
        e = jnp.exp(s - m)
        probs.append(e * pl.reciprocal(jnp.sum(e, axis=-1, keepdims=True),
                                       approx=True))                     # (D, D)

    # attention * V in the expanded frame:
    #   a[d1, c] = sum_d2 p[d1, d2] * v_b[c % DK, d2]
    attn = [lax.dot_general(probs[b], wv[b], NT_DIMS,
                            preferred_element_type=jnp.float32)           # (D, D)
            for b in range(B)]

    # head merge: merged_b[i, h*DK + k] = attn_value(query row i*H+h, head-dim k)
    # realised as ONE selection matmul per batch: row-group sum after masking
    # each row to its own head's column block.
    merged = jnp.concatenate(
        [jnp.dot(rsel, attn[b] * hp, preferred_element_type=jnp.float32)  # (S, D)
         for b in range(B)], axis=0)                                      # (B*S, D)

    # ---- W_O + residual + LayerNorm1 ----
    mha = jnp.dot(merged, wfull[:, 3 * D:4 * D],
                  preferred_element_type=jnp.float32) + bo
    h0 = x + mha
    mu1 = jnp.mean(h0, axis=-1, keepdims=True)
    var1 = jnp.mean((h0 - mu1) ** 2, axis=-1, keepdims=True)
    h1 = (h0 - mu1) * lax.rsqrt(var1 + EPS) * g1 + be1

    # ---- FFN + residual + LayerNorm2 ----
    z = jnp.maximum(jnp.dot(h1, w1_ref[...],
                            preferred_element_type=jnp.float32) + b1, 0.0)
    ffn = jnp.dot(z, w2_ref[...], preferred_element_type=jnp.float32) + b2
    h2 = h1 + ffn
    mu2 = jnp.mean(h2, axis=-1, keepdims=True)
    var2 = jnp.mean((h2 - mu2) ** 2, axis=-1, keepdims=True)
    out_ref[...] = (h2 - mu2) * lax.rsqrt(var2 + EPS) * g2 + be2


# ------------------------------ glue / wrapper --------------------------------
def _pack_params(params):
    """Host-side packing: fused QKVO weight slab + all 1-row vectors in one (8, DFF) slab."""
    w_slab = jnp.concatenate([params['Wq'], params['Wk'], params['Wv'],
                              params['Wo']], axis=1)                     # (D, 4D)
    bqkv = jnp.concatenate([params['bq'], params['bk'], params['bv']], axis=1)
    vecs = jnp.zeros((8, DFF), jnp.float32)
    vecs = vecs.at[0, 0:DFF].set(params['b1'][0])
    vecs = vecs.at[1, 0:3 * D].set(bqkv[0])
    vecs = vecs.at[2, 0:D].set(params['bo'][0])
    vecs = vecs.at[3, 0:D].set(params['b2'][0])
    vecs = vecs.at[4, 0:D].set(params['g1'][0])
    vecs = vecs.at[5, 0:D].set(params['be1'][0])
    vecs = vecs.at[6, 0:D].set(params['g2'][0])
    vecs = vecs.at[7, 0:D].set(params['be2'][0])
    return w_slab, params['W1'], params['W2'], vecs


def encoder_layer_forward(batch_X, padding_mask, params, dropout_rate=0.0):
    del dropout_rate  # accepted but unused, exactly like the reference forward
    w_slab, w1, w2, vecs = _pack_params(params)
    masks = jnp.asarray(_MASKS_NP)

    x_flat = batch_X.reshape(B * S, D)
    # per-query scale (0 if padded else 1/sqrt(d_k)), expanded to Gram-row index
    # d = i*H + h  (query position i = d // H).
    keep = jnp.where(padding_mask == 0.0, 0.0, INV_SQRT_DK).astype(jnp.float32)  # (B, S)
    q_scale = jnp.repeat(keep, H, axis=1)                                        # (B, D)

    out_flat = pl.pallas_call(
        encoder_layer_kernel,
        out_shape=jax.ShapeDtypeStruct((B * S, D), jnp.float32),
        in_specs=[pl.BlockSpec(memory_space=VMEM)] * 7,
        out_specs=pl.BlockSpec(memory_space=VMEM),
    )(x_flat, w_slab, w1, w2, vecs, masks, q_scale)
    return out_flat.reshape(B, S, D)


# ------------------------- pure-JAX reference (check) --------------------------
def _split_heads(p_flat):
    """Reproduce: proj.permute(0,2,1).reshape(B,S,H,dk).permute(0,2,1,3)."""
    p = p_flat.reshape(B, S, D)
    p = jnp.transpose(p, (0, 2, 1))            # (B, D, S)
    p = p.reshape(B, S, H, DK)                 # row-major regroup (torch .reshape)
    return jnp.transpose(p, (0, 2, 1, 3))      # (B, H, S, DK)


def reference_forward(batch_X, padding_mask, params):
    x = batch_X.reshape(B * S, D)
    q = x @ params['Wq'] + params['bq']
    k = x @ params['Wk'] + params['bk']
    v = x @ params['Wv'] + params['bv']
    qh, kh, vh = (_split_heads(t) for t in (q, k, v))          # (B,H,S,dk)
    scores = jnp.einsum('bhqd,bhkd->bhqk', qh, kh)
    mask = (padding_mask == 0.0)[:, None, :, None]             # (B,1,S,1) query mask
    denom = jnp.where(mask, -jnp.inf, jnp.float32(SQRT_DK))
    scaled = scores / denom
    p = jax.nn.softmax(scaled, axis=-1)
    attn = jnp.einsum('bhqk,bhkd->bhqd', p, vh)
    merged = jnp.transpose(attn, (0, 2, 1, 3)).reshape(B * S, D)
    h = x + merged @ params['Wo'] + params['bo']

    def ln(t, g, b):
        mu = jnp.mean(t, axis=-1, keepdims=True)
        var = jnp.mean((t - mu) ** 2, axis=-1, keepdims=True)
        return (t - mu) / jnp.sqrt(var + EPS) * g + b

    h1 = ln(h, params['g1'], params['be1'])
    ffn = jnp.maximum(h1 @ params['W1'] + params['b1'], 0.0) @ params['W2'] + params['b2']
    return ln(h1 + ffn, params['g2'], params['be2']).reshape(B, S, D)


# ------------------------------- params init ----------------------------------
def init_params(key):
    ks = jax.random.split(key, 6)

    def linear(k, fan_in, fan_out):
        bound = 1.0 / (fan_in ** 0.5)
        kw, kb = jax.random.split(k)
        W = jax.random.uniform(kw, (fan_in, fan_out), jnp.float32, -bound, bound)
        b = jax.random.uniform(kb, (1, fan_out), jnp.float32, -bound, bound)
        return W, b

    Wq, bq = linear(ks[0], D, D)
    Wk, bk = linear(ks[1], D, D)
    Wv, bv = linear(ks[2], D, D)
    Wo, bo = linear(ks[3], D, D)
    W1, b1 = linear(ks[4], D, DFF)
    W2, b2 = linear(ks[5], DFF, D)
    return dict(
        Wq=Wq, bq=bq, Wk=Wk, bk=bk, Wv=Wv, bv=bv, Wo=Wo, bo=bo,
        W1=W1, b1=b1, W2=W2, b2=b2,
        g1=jnp.ones((1, D), jnp.float32), be1=jnp.zeros((1, D), jnp.float32),
        g2=jnp.ones((1, D), jnp.float32), be2=jnp.zeros((1, D), jnp.float32),
    )


if __name__ == "__main__":
    key = jax.random.PRNGKey(0)
    kx, kp = jax.random.split(key)
    batch_X = jax.random.normal(kx, (B, S, D), jnp.float32)
    padding_mask = jnp.ones((B, S), jnp.float32).at[1, 5:].set(0.0)  # batch 1 has 3 pads
    params = init_params(kp)

    out = encoder_layer_forward(batch_X, padding_mask, params, dropout_rate=0.0)
    out = jax.block_until_ready(out)

    ref = reference_forward(batch_X, padding_mask, params)
    max_err = float(jnp.max(jnp.abs(out - ref)))
    assert out.shape == (B, S, D)
    assert max_err < 1e-2, f"mismatch vs reference: max abs err {max_err}"
    print("KERNEL_OK")
</pallas_src>

<mosaic_0001>
module attributes {stable_mosaic.version = 11 : i64} {
  func.func @encoder_layer_kernel(%arg0: memref<16x32xf32, #tpu.memory_space<vmem>>, %arg1: memref<32x128xf32, #tpu.memory_space<vmem>>, %arg2: memref<32x128xf32, #tpu.memory_space<vmem>>, %arg3: memref<128x32xf32, #tpu.memory_space<vmem>>, %arg4: memref<8x128xf32, #tpu.memory_space<vmem>>, %arg5: memref<72x32xf32, #tpu.memory_space<vmem>>, %arg6: memref<2x32xf32, #tpu.memory_space<vmem>>, %arg7: memref<16x32xf32, #tpu.memory_space<vmem>>) attributes {dimension_semantics = [], scalar_prefetch = 0 : i64, scratch_operands = 0 : i64, tpu.core_type = #tpu.core_type<tc>} {
    %c0 = arith.constant 0 : index
    %c0_0 = arith.constant 0 : index
    %0 = vector.load %arg0[%c0, %c0_0] : memref<16x32xf32, #tpu.memory_space<vmem>>, vector<16x32xf32>
    %c0_1 = arith.constant 0 : index
    %c0_2 = arith.constant 0 : index
    %1 = vector.load %arg4[%c0_1, %c0_2] : memref<8x128xf32, #tpu.memory_space<vmem>>, vector<1x128xf32>
    %c1 = arith.constant 1 : index
    %c0_3 = arith.constant 0 : index
    %2 = vector.load %arg4[%c1, %c0_3] : memref<8x128xf32, #tpu.memory_space<vmem>>, vector<1x96xf32>
    %c2 = arith.constant 2 : index
    %c0_4 = arith.constant 0 : index
    %3 = vector.load %arg4[%c2, %c0_4] : memref<8x128xf32, #tpu.memory_space<vmem>>, vector<1x32xf32>
    %c3 = arith.constant 3 : index
    %c0_5 = arith.constant 0 : index
    %4 = vector.load %arg4[%c3, %c0_5] : memref<8x128xf32, #tpu.memory_space<vmem>>, vector<1x32xf32>
    %c4 = arith.constant 4 : index
    %c0_6 = arith.constant 0 : index
    %5 = vector.load %arg4[%c4, %c0_6] : memref<8x128xf32, #tpu.memory_space<vmem>>, vector<1x32xf32>
    %c5 = arith.constant 5 : index
    %c0_7 = arith.constant 0 : index
    %6 = vector.load %arg4[%c5, %c0_7] : memref<8x128xf32, #tpu.memory_space<vmem>>, vector<1x32xf32>
    %c6 = arith.constant 6 : index
    %c0_8 = arith.constant 0 : index
    %7 = vector.load %arg4[%c6, %c0_8] : memref<8x128xf32, #tpu.memory_space<vmem>>, vector<1x32xf32>
    %c7 = arith.constant 7 : index
    %c0_9 = arith.constant 0 : index
    %8 = vector.load %arg4[%c7, %c0_9] : memref<8x128xf32, #tpu.memory_space<vmem>>, vector<1x32xf32>
    %c0_10 = arith.constant 0 : index
    %c0_11 = arith.constant 0 : index
    %9 = vector.load %arg5[%c0_10, %c0_11] : memref<72x32xf32, #tpu.memory_space<vmem>>, vector<32x32xf32>
    %c32 = arith.constant 32 : index
    %c0_12 = arith.constant 0 : index
    %10 = vector.load %arg5[%c32, %c0_12] : memref<72x32xf32, #tpu.memory_space<vmem>>, vector<32x32xf32>
    %c64 = arith.constant 64 : index
    %c0_13 = arith.constant 0 : index
    %11 = vector.load %arg5[%c64, %c0_13] : memref<72x32xf32, #tpu.memory_space<vmem>>, vector<8x32xf32>
    %c0_14 = arith.constant 0 : index
    %c0_15 = arith.constant 0 : index
    %12 = vector.load %arg1[%c0_14, %c0_15] : memref<32x128xf32, #tpu.memory_space<vmem>>, vector<32x128xf32>
    %13 = vector.extract_strided_slice %12 {offsets = [0, 0], sizes = [32, 96], strides = [1, 1]} : vector<32x128xf32> to vector<32x96xf32>
    %cst = arith.constant dense<0.000000e+00> : vector<16x96xf32>
    %14 = tpu.matmul %0, %13, %cst {dimension_numbers = #tpu.dot_dimension_numbers<[1], [0], [0], [1], [0, 0, 1, 1], [], []>} : vector<16x32xf32>, vector<32x96xf32>, vector<16x96xf32> -> vector<16x96xf32>
    %15 = vector.broadcast %2 : vector<1x96xf32> to vector<16x96xf32>
    %16 = arith.addf %14, %15 : vector<16x96xf32>
    %17 = vector.extract_strided_slice %16 {offsets = [0, 0], sizes = [8, 32], strides = [1, 1]} : vector<16x96xf32> to vector<8x32xf32>
    %c0_16 = arith.constant 0 : index
    %c0_17 = arith.constant 0 : index
    %18 = vector.load %arg6[%c0_16, %c0_17] : memref<2x32xf32, #tpu.memory_space<vmem>>, vector<1x32xf32>
    %19 = vector.broadcast %18 : vector<1x32xf32> to vector<8x32xf32>
    %20 = arith.mulf %17, %19 : vector<8x32xf32>
    %21 = vector.extract_strided_slice %16 {offsets = [0, 32], sizes = [8, 32], strides = [1, 1]} : vector<16x96xf32> to vector<8x32xf32>
    %22 = vector.extract_strided_slice %16 {offsets = [0, 64], sizes = [8, 32], strides = [1, 1]} : vector<16x96xf32> to vector<8x32xf32>
    %cst_18 = arith.constant dense<0.000000e+00> : vector<32x32xf32>
    %23 = tpu.matmul %20, %21, %cst_18 {dimension_numbers = #tpu.dot_dimension_numbers<[0], [0], [1], [1], [0, 1, 1, 1], [], []>} : vector<8x32xf32>, vector<8x32xf32>, vector<32x32xf32> -> vector<32x32xf32>
    %24 = tpu.concatenate %22, %22, %22, %22 in 0 : vector<8x32xf32>, vector<8x32xf32>, vector<8x32xf32>, vector<8x32xf32> -> vector<32x32xf32>
    %25 = vector.extract_strided_slice %16 {offsets = [8, 0], sizes = [8, 32], strides = [1, 1]} : vector<16x96xf32> to vector<8x32xf32>
    %c1_19 = arith.constant 1 : index
    %c0_20 = arith.constant 0 : index
    %26 = vector.load %arg6[%c1_19, %c0_20] : memref<2x32xf32, #tpu.memory_space<vmem>>, vector<1x32xf32>
    %27 = vector.broadcast %26 : vector<1x32xf32> to vector<8x32xf32>
    %28 = arith.mulf %25, %27 : vector<8x32xf32>
    %29 = vector.extract_strided_slice %16 {offsets = [8, 32], sizes = [8, 32], strides = [1, 1]} : vector<16x96xf32> to vector<8x32xf32>
    %30 = vector.extract_strided_slice %16 {offsets = [8, 64], sizes = [8, 32], strides = [1, 1]} : vector<16x96xf32> to vector<8x32xf32>
    %cst_21 = arith.constant dense<0.000000e+00> : vector<32x32xf32>
    %31 = tpu.matmul %28, %29, %cst_21 {dimension_numbers = #tpu.dot_dimension_numbers<[0], [0], [1], [1], [0, 1, 1, 1], [], []>} : vector<8x32xf32>, vector<8x32xf32>, vector<32x32xf32> -> vector<32x32xf32>
    %32 = tpu.concatenate %30, %30, %30, %30 in 0 : vector<8x32xf32>, vector<8x32xf32>, vector<8x32xf32>, vector<8x32xf32> -> vector<32x32xf32>
    %33 = arith.addf %23, %9 : vector<32x32xf32>
    %cst_22 = arith.constant dense<0xFF800000> : vector<32xf32>
    %34 = vector.multi_reduction <maximumf>, %33, %cst_22 [1] : vector<32x32xf32> to vector<32xf32>
    %35 = vector.shape_cast %34 : vector<32xf32> to vector<32x1xf32>
    %36 = vector.broadcast %35 : vector<32x1xf32> to vector<32x32xf32>
    %37 = arith.subf %33, %36 : vector<32x32xf32>
    %38 = math.exp %37 : vector<32x32xf32>
    %cst_23 = arith.constant dense<0.000000e+00> : vector<32xf32>
    %39 = vector.multi_reduction <add>, %38, %cst_23 [1] : vector<32x32xf32> to vector<32xf32>
    %40 = vector.shape_cast %39 : vector<32xf32> to vector<32x1xf32>
    %41 = tpu.reciprocal %40 {approx = true} : vector<32x1xf32> -> vector<32x1xf32>
    %42 = vector.broadcast %41 : vector<32x1xf32> to vector<32x32xf32>
    %43 = arith.mulf %38, %42 : vector<32x32xf32>
    %44 = arith.addf %31, %9 : vector<32x32xf32>
    %cst_24 = arith.constant dense<0xFF800000> : vector<32xf32>
    %45 = vector.multi_reduction <maximumf>, %44, %cst_24 [1] : vector<32x32xf32> to vector<32xf32>
    %46 = vector.shape_cast %45 : vector<32xf32> to vector<32x1xf32>
    %47 = vector.broadcast %46 : vector<32x1xf32> to vector<32x32xf32>
    %48 = arith.subf %44, %47 : vector<32x32xf32>
    %49 = math.exp %48 : vector<32x32xf32>
    %cst_25 = arith.constant dense<0.000000e+00> : vector<32xf32>
    %50 = vector.multi_reduction <add>, %49, %cst_25 [1] : vector<32x32xf32> to vector<32xf32>
    %51 = vector.shape_cast %50 : vector<32xf32> to vector<32x1xf32>
    %52 = tpu.reciprocal %51 {approx = true} : vector<32x1xf32> -> vector<32x1xf32>
    %53 = vector.broadcast %52 : vector<32x1xf32> to vector<32x32xf32>
    %54 = arith.mulf %49, %53 : vector<32x32xf32>
    %cst_26 = arith.constant dense<0.000000e+00> : vector<32x32xf32>
    %55 = tpu.matmul %43, %24, %cst_26 {dimension_numbers = #tpu.dot_dimension_numbers<[1], [1], [0], [0], [0, 0, 1, 0], [], []>} : vector<32x32xf32>, vector<32x32xf32>, vector<32x32xf32> -> vector<32x32xf32>
    %cst_27 = arith.constant dense<0.000000e+00> : vector<32x32xf32>
    %56 = tpu.matmul %54, %32, %cst_27 {dimension_numbers = #tpu.dot_dimension_numbers<[1], [1], [0], [0], [0, 0, 1, 0], [], []>} : vector<32x32xf32>, vector<32x32xf32>, vector<32x32xf32> -> vector<32x32xf32>
    %57 = arith.mulf %55, %10 : vector<32x32xf32>
    %cst_28 = arith.constant dense<0.000000e+00> : vector<8x32xf32>
    %58 = tpu.matmul %11, %57, %cst_28 {dimension_numbers = #tpu.dot_dimension_numbers<[1], [0], [0], [1], [0, 0, 1, 1], [], []>} : vector<8x32xf32>, vector<32x32xf32>, vector<8x32xf32> -> vector<8x32xf32>
    %59 = arith.mulf %56, %10 : vector<32x32xf32>
    %cst_29 = arith.constant dense<0.000000e+00> : vector<8x32xf32>
    %60 = tpu.matmul %11, %59, %cst_29 {dimension_numbers = #tpu.dot_dimension_numbers<[1], [0], [0], [1], [0, 0, 1, 1], [], []>} : vector<8x32xf32>, vector<32x32xf32>, vector<8x32xf32> -> vector<8x32xf32>
    %61 = tpu.concatenate %58, %60 in 0 : vector<8x32xf32>, vector<8x32xf32> -> vector<16x32xf32>
    %62 = vector.extract_strided_slice %12 {offsets = [0, 96], sizes = [32, 32], strides = [1, 1]} : vector<32x128xf32> to vector<32x32xf32>
    %cst_30 = arith.constant dense<0.000000e+00> : vector<16x32xf32>
    %63 = tpu.matmul %61, %62, %cst_30 {dimension_numbers = #tpu.dot_dimension_numbers<[1], [0], [0], [1], [0, 0, 1, 1], [], []>} : vector<16x32xf32>, vector<32x32xf32>, vector<16x32xf32> -> vector<16x32xf32>
    %64 = vector.broadcast %3 : vector<1x32xf32> to vector<16x32xf32>
    %65 = arith.addf %63, %64 : vector<16x32xf32>
    %66 = arith.addf %0, %65 : vector<16x32xf32>
    %cst_31 = arith.constant dense<0.000000e+00> : vector<16xf32>
    %67 = vector.multi_reduction <add>, %66, %cst_31 [1] : vector<16x32xf32> to vector<16xf32>
    %68 = vector.shape_cast %67 : vector<16xf32> to vector<16x1xf32>
    %cst_32 = arith.constant 3.200000e+01 : f32
    %69 = vector.broadcast %cst_32 : f32 to vector<16x1xf32>
    %70 = arith.divf %68, %69 : vector<16x1xf32>
    %71 = vector.broadcast %70 : vector<16x1xf32> to vector<16x32xf32>
    %72 = arith.subf %66, %71 : vector<16x32xf32>
    %73 = arith.mulf %72, %72 : vector<16x32xf32>
    %cst_33 = arith.constant dense<0.000000e+00> : vector<16xf32>
    %74 = vector.multi_reduction <add>, %73, %cst_33 [1] : vector<16x32xf32> to vector<16xf32>
    %75 = vector.shape_cast %74 : vector<16xf32> to vector<16x1xf32>
    %cst_34 = arith.constant 3.200000e+01 : f32
    %76 = vector.broadcast %cst_34 : f32 to vector<16x1xf32>
    %77 = arith.divf %75, %76 : vector<16x1xf32>
    %78 = vector.broadcast %70 : vector<16x1xf32> to vector<16x32xf32>
    %79 = arith.subf %66, %78 : vector<16x32xf32>
    %cst_35 = arith.constant 9.99999974E-6 : f32
    %80 = vector.broadcast %cst_35 : f32 to vector<16x1xf32>
    %81 = arith.addf %77, %80 : vector<16x1xf32>
    %82 = math.rsqrt %81 : vector<16x1xf32>
    %83 = vector.broadcast %82 : vector<16x1xf32> to vector<16x32xf32>
    %84 = arith.mulf %79, %83 : vector<16x32xf32>
    %85 = vector.broadcast %5 : vector<1x32xf32> to vector<16x32xf32>
    %86 = arith.mulf %84, %85 : vector<16x32xf32>
    %87 = vector.broadcast %6 : vector<1x32xf32> to vector<16x32xf32>
    %88 = arith.addf %86, %87 : vector<16x32xf32>
    %c0_36 = arith.constant 0 : index
    %c0_37 = arith.constant 0 : index
    %89 = vector.load %arg2[%c0_36, %c0_37] : memref<32x128xf32, #tpu.memory_space<vmem>>, vector<32x128xf32>
    %cst_38 = arith.constant dense<0.000000e+00> : vector<16x128xf32>
    %90 = tpu.matmul %88, %89, %cst_38 {dimension_numbers = #tpu.dot_dimension_numbers<[1], [0], [0], [1], [0, 0, 1, 1], [], []>} : vector<16x32xf32>, vector<32x128xf32>, vector<16x128xf32> -> vector<16x128xf32>
    %91 = vector.broadcast %1 : vector<1x128xf32> to vector<16x128xf32>
    %92 = arith.addf %90, %91 : vector<16x128xf32>
    %cst_39 = arith.constant 0.000000e+00 : f32
    %93 = vector.broadcast %cst_39 : f32 to vector<16x128xf32>
    %94 = arith.maximumf %92, %93 : vector<16x128xf32>
    %c0_40 = arith.constant 0 : index
    %c0_41 = arith.constant 0 : index
    %95 = vector.load %arg3[%c0_40, %c0_41] : memref<128x32xf32, #tpu.memory_space<vmem>>, vector<128x32xf32>
    %cst_42 = arith.constant dense<0.000000e+00> : vector<16x32xf32>
    %96 = tpu.matmul %94, %95, %cst_42 {dimension_numbers = #tpu.dot_dimension_numbers<[1], [0], [0], [1], [0, 0, 1, 1], [], []>} : vector<16x128xf32>, vector<128x32xf32>, vector<16x32xf32> -> vector<16x32xf32>
    %97 = vector.broadcast %4 : vector<1x32xf32> to vector<16x32xf32>
    %98 = arith.addf %96, %97 : vector<16x32xf32>
    %99 = arith.addf %88, %98 : vector<16x32xf32>
    %cst_43 = arith.constant dense<0.000000e+00> : vector<16xf32>
    %100 = vector.multi_reduction <add>, %99, %cst_43 [1] : vector<16x32xf32> to vector<16xf32>
    %101 = vector.shape_cast %100 : vector<16xf32> to vector<16x1xf32>
    %cst_44 = arith.constant 3.200000e+01 : f32
    %102 = vector.broadcast %cst_44 : f32 to vector<16x1xf32>
    %103 = arith.divf %101, %102 : vector<16x1xf32>
    %104 = vector.broadcast %103 : vector<16x1xf32> to vector<16x32xf32>
    %105 = arith.subf %99, %104 : vector<16x32xf32>
    %106 = arith.mulf %105, %105 : vector<16x32xf32>
    %cst_45 = arith.constant dense<0.000000e+00> : vector<16xf32>
    %107 = vector.multi_reduction <add>, %106, %cst_45 [1] : vector<16x32xf32> to vector<16xf32>
    %108 = vector.shape_cast %107 : vector<16xf32> to vector<16x1xf32>
    %cst_46 = arith.constant 3.200000e+01 : f32
    %109 = vector.broadcast %cst_46 : f32 to vector<16x1xf32>
    %110 = arith.divf %108, %109 : vector<16x1xf32>
    %111 = vector.broadcast %103 : vector<16x1xf32> to vector<16x32xf32>
    %112 = arith.subf %99, %111 : vector<16x32xf32>
    %cst_47 = arith.constant 9.99999974E-6 : f32
    %113 = vector.broadcast %cst_47 : f32 to vector<16x1xf32>
    %114 = arith.addf %110, %113 : vector<16x1xf32>
    %115 = math.rsqrt %114 : vector<16x1xf32>
    %116 = vector.broadcast %115 : vector<16x1xf32> to vector<16x32xf32>
    %117 = arith.mulf %112, %116 : vector<16x32xf32>
    %118 = vector.broadcast %7 : vector<1x32xf32> to vector<16x32xf32>
    %119 = arith.mulf %117, %118 : vector<16x32xf32>
    %120 = vector.broadcast %8 : vector<1x32xf32> to vector<16x32xf32>
    %121 = arith.addf %119, %120 : vector<16x32xf32>
    %c0_48 = arith.constant 0 : index
    %c0_49 = arith.constant 0 : index
    %122 = vector.load %arg7[%c0_48, %c0_49] : memref<16x32xf32, #tpu.memory_space<vmem>>, vector<16x32xf32>
    tpu.vector_store %arg7[%c0_48, %c0_49], %121 {strides = array<i32>} : memref<16x32xf32, #tpu.memory_space<vmem>>, vector<16x32xf32>,
    return
  }
}

</mosaic_0001>

<bundles_post_ra>
// kernel: tpu_custom_call.1
= control target key start
LH: loop header
LB: loop body
LE: loop exit
PB: predicated region body
PF: predicated region fallthrough
CT: control target
= control target key end

     0   :  { %vm54_vm0 = vcmask 261120   ;;  %s1972_s0 = inlined_call_operand.vmem [shape: f32[16,32], index: 0, kind: input, shape index: {}]   ;;  %s1973_s1 = inlined_call_operand.vmem [shape: f32[32,128], index: 1, kind: input, shape index: {}]   ;;  %s1974_s2 = inlined_call_operand.vmem [shape: f32[32,128], index: 2, kind: input, shape index: {}]   ;;  %s1975_s3 = inlined_call_operand.vmem [shape: f32[128,32], index: 3, kind: input, shape index: {}]   ;;  %s1976_s4 = inlined_call_operand.vmem [shape: f32[8,128], index: 4, kind: input, shape index: {}]   ;;  %s1977_s5 = inlined_call_operand.vmem [shape: f32[72,32], index: 5, kind: input, shape index: {}]   ;;  %s1978_s6 = inlined_call_operand.vmem [shape: f32[2,32], index: 6, kind: input, shape index: {}]   ;;  %s1979_s7 = inlined_call_operand.hbm [shape: f32[16,32], index: 7, kind: output, shape index: {}]  }
   0x1   :  { %v1717_v0 = vld [vmem:[%s1973_s1] sm:$0xff]  ;;  %v1722_v1 = vld [vmem:[%s1973_s1 + $0x8] sm:$0xff]  ;;  %v1727_v2 = vld [vmem:[%s1973_s1 + $0x10] sm:$0xff] }
   0x2   :  { %v1591_v3 = vpack.i.bf16 %v1722_v1, %v1717_v0  ;;  %v1490_v4 = vpack.c.bf16 %v1722_v1, %v1717_v0  ;;  %v1736_v5 = vld [vmem:[%s1973_s1 + $0x18] sm:$0xff]  ;;  %v1741_v6 = vld [vmem:[%s1972_s0] sm:$0xff] }
   0x3   :  { %v1494_v7 = vpack.c.bf16 %v1736_v5, %v1727_v2  ;;  %1364 = vmatprep.mubr.msk.f32.mxu0 %vm54_vm0, %v1741_v6 }
   0x4   :  { %12 = vsyncpa [#allocation3], 0  ;;  %1491 = vmatprep.subr.bf16.mxu0 %v1490_v4  ;;  %v1750_v8 = vld [vmem:[%s1972_s0 + $0x8] sm:$0xff]  ;;  %v1242_v9 = vld [vmem:[%s1976_s4 + $0x1] ss:$0 sm:$0xff]  ;;  %s1665_s16 = smov 96   ;;  %v1596_v63 = vpack.i.bf16 %v1736_v5, %v1727_v2 }
   0x5   :  { %1493 = vmatpush3.bf16.msra.mxu0 %v1490_v4  ;;  %v1245_v12 = vld [vmem:[%s1978_s6] ss:$0 sm:$0xff]  ;;  %v1246_v16 = vld [vmem:[%s1978_s6 + $0x1] ss:$0 sm:$0xff]  ;;  %vm184_vm1 = vcmask 64512   ;;  %v38_v28 = vld [vmem:[%s1977_s5 + $0x8] sm:$0xff] }
   0x6   :  { %1495 = vmatprep.subr.bf16.mxu0 %v1494_v7  ;;  %v37_v29 = vld [vmem:[%s1977_s5] sm:$0xff]  ;;  %v40_v36 = vld [vmem:[%s1977_s5 + $0x18] sm:$0xff]  ;;  %v39_v38 = vld [vmem:[%s1977_s5 + $0x10] sm:$0xff]  ;;  %s1666_s25 = smov 64   ;;  %vm1668_vm3 = vmmov 0   ;;  %s1670_s26 = smov 32  }
   0x7   :  { %vm1798_vm2 = vmpackc.low %vm54_vm0, %vm54_vm0  ;;  %v44_v0 = vld [vmem:[%s1977_s5 + $0x38] sm:$0xff]  ;;  %v43_v1 = vld [vmem:[%s1977_s5 + $0x30] sm:$0xff]  ;;  %s1671_s11 = smov [#allocation2]  }
   0x8   :  { %s1231_s12 = sshll.u32 %s1671_s11, 4  ;;  %s1232_s12 = int_to_ptr.vmem [resolvable:$true] %s1231_s12 }
   0x9   :  { %1497 = vmatpush3.bf16.msra.mxu0 %v1494_v7  ;;  %s1641_s1 = scalar_lea.vmem %s1232_s12, 256  ;;  %p1646_p1 = scmp.lt.s32.totalorder %s1232_s12, %s1232_s12 }
   0xa   :  { %p1642_p0 = scmp.ne.s32.totalorder %s1232_s12, %s1641_s1  ;;  %p1647_p2 = scmp.lt.s32.totalorder %s1641_s1, %s1641_s1 }
   0xc   :  { %1365 = vmatmul.mubr.msk.f32.vlgmr.msra.gmra.mrb[0].mxu0 %vm54_vm0, %v1750_v8  ;;  %p1648_p3 = por %p1647_p2, %p1646_p1 }
   0xe   :  { %p1649_p4 = pnand %p1648_p3, %p1642_p0 }
  0xdf   :  { %v1366_v10 = vpop.f32.mrb[0].mxu0 }
  0xe0   :  { %v127_v11 = vpop.f32.mrb[1].mxu0  ;;  %v1760_v15 = vadd.f32 %v1366_v10, %v1242_v9 }
  0xe1   :  { %v128_v13 = vadd.f32 %v1242_v9, %v127_v11 }
  0xe2   :  { %v147_v17 = vmul.f32 %v1246_v16, %v1760_v15 }
  0xe3   :  { %181 = vrot.lane.b32.xlu0 %v128_v13, %s1665_s16  ;;  %v141_v14 = vmul.f32 %v1245_v12, %v128_v13 }
  0xe5   :  { %148 = vxpose.xlu1.b32.start.end [1/1] (short) (narrow) %v141_v14, 32 }
  0xe7   :  { %359 = vrot.lane.b32.xlu0 %v1760_v15, %s1665_s16 }
  0xf2   :  { %326 = vxpose.xlu1.b32.start.end [1/1] (short) (narrow) %v147_v17, 32 }
 0x155   :  { %v182_v18 = vpop.permute.xlu0 %181 }
 0x156   :  { %1367 = vmatprep.subr.mxu1 %v182_v18 }
 0x157   :  { %1368 = vmatpush3.msra.mxu1 %v182_v18 }
 0x159   :  { %v360_v19 = vpop.permute.xlu0 %359 }
 0x15a   :  { %1375 = vmatprep.subr.mxu1 %v360_v19 }
 0x165   :  { %v164_v20 = vpop.trf.xlu1 }
 0x166   :  { %1369 = vmatprep.mubr.msk.f32.mxu1 %vm184_vm1, %v164_v20 }
 0x169   :  { %v165_v21 = vpop.trf.xlu1 }
 0x16a   :  { %1370 = vmatmul.mubr.msk.f32.vlgmr.msra.gmra.mrb[0].mxu1 %vm184_vm1, %v165_v21 }
 0x16b   :  { %1376 = vmatpush3.msra.mxu1 %v360_v19 }
 0x16d   :  { %v166_v22 = vpop.trf.xlu1 }
 0x16e   :  { %1372 = vmatprep.mubr.msk.f32.mxu1 %vm184_vm1, %v166_v22 }
 0x171   :  { %v167_v23 = vpop.trf.xlu1 }
 0x172   :  { %1373 = vmatmul.mubr.msk.f32.gmra.mrb[2].mxu1 %vm184_vm1, %v167_v23 }
 0x175   :  { %v342_v24 = vpop.trf.xlu1 }
 0x176   :  { %1377 = vmatprep.mubr.msk.f32.mxu1 %vm184_vm1, %v342_v24 }
 0x179   :  { %v343_v25 = vpop.trf.xlu1 }
 0x17a   :  { %1378 = vmatmul.mubr.msk.f32.vlgmr.msra.gmra.mrb[4].mxu1 %vm184_vm1, %v343_v25 }
 0x17d   :  { %v344_v26 = vpop.trf.xlu1 }
 0x17e   :  { %1380 = vmatprep.mubr.msk.f32.mxu1 %vm184_vm1, %v344_v26 }
 0x181   :  { %v345_v27 = vpop.trf.xlu1 }
 0x182   :  { %1381 = vmatmul.mubr.msk.f32.gmra.mrb[6].mxu1 %vm184_vm1, %v345_v27 }
 0x23d   :  { %v1371_v30 = vpop.f32.mrb[0].mxu1 }
 0x23e   :  { %v269_v31 = vadd.f32 %v1371_v30, %v38_v28  ;;  %v263_v32 = vpop.f32.mrb[1].mxu1 }
 0x23f   :  { %v264_v33 = vadd.f32 %v263_v32, %v37_v29 }
 0x240   :  { %v285_v34 = vsel %vm54_vm0, %v269_v31, -inf }
 0x241   :  { %286 = vmax.xlane.f32.xlu1 %v285_v34  ;;  %v282_v35 = vsel %vm54_vm0, %v264_v33, -inf }
 0x242   :  { %283 = vmax.xlane.f32.xlu0 %v282_v35 }
 0x245   :  { %v1374_v37 = vpop.f32.mrb[2].mxu1 }
 0x246   :  { %v279_v39 = vadd.f32 %v1374_v37, %v40_v36  ;;  %v273_v40 = vpop.f32.mrb[3].mxu1 }
 0x247   :  { %v274_v41 = vadd.f32 %v273_v40, %v39_v38 }
 0x248   :  { %v291_v42 = vsel %vm54_vm0, %v279_v39, -inf }
 0x249   :  { %292 = vmax.xlane.f32.xlu0 %v291_v42  ;;  %v288_v43 = vsel %vm54_vm0, %v274_v41, -inf }
 0x24d   :  { %289 = vmax.xlane.f32.xlu0 %v288_v43  ;;  %v1379_v44 = vpop.f32.mrb[4].mxu1 }
 0x24e   :  { %v446_v45 = vadd.f32 %v1379_v44, %v38_v28  ;;  %v440_v46 = vpop.f32.mrb[5].mxu1 }
 0x24f   :  { %v441_v47 = vadd.f32 %v440_v46, %v37_v29 }
 0x250   :  { %v462_v48 = vsel %vm54_vm0, %v446_v45, -inf }
 0x251   :  { %463 = vmax.xlane.f32.xlu0 %v462_v48  ;;  %v459_v49 = vsel %vm54_vm0, %v441_v47, -inf }
 0x252   :  { %503 = vrot.lane.b32.xlu1 %v128_v13, %s1666_s25 }
 0x255   :  { %460 = vmax.xlane.f32.xlu0 %v459_v49  ;;  %v1382_v50 = vpop.f32.mrb[6].mxu1 }
 0x256   :  { %v450_v51 = vpop.f32.mrb[7].mxu1  ;;  %v456_v53 = vadd.f32 %v1382_v50, %v40_v36 }
 0x257   :  { %v451_v52 = vadd.f32 %v450_v51, %v39_v38 }
 0x258   :  { %v468_v55 = vsel %vm54_vm0, %v456_v53, -inf }
 0x259   :  { %v465_v54 = vsel %vm54_vm0, %v451_v52, -inf }
 0x25a   :  { %466 = vmax.xlane.f32.xlu0 %v465_v54 }
 0x25e   :  { %469 = vmax.xlane.f32.xlu0 %v468_v55 }
 0x2ce   :  { %v287_v56 = vpop.xlane.xlu1 %286 }
 0x2cf   :  { %v295_v57 = vsub.f32 %v269_v31, %v287_v56  ;;  %v284_v58 = vpop.xlane.xlu0 %283 }
 0x2d0   :  { %v294_v59 = vsub.f32 %v264_v33, %v284_v58 }
 0x2d1   :  { %v300_v60 = vmul.f32 1.442695, %v295_v57 }
 0x2d2   :  { %v298_v61 = vmul.f32 1.442695, %v294_v59  ;;  %v504_v62 = vpop.permute.xlu1 %503 }
 0x2d3   :  { %1601 = vpow2.f32 %v300_v60  ;;  %v1498_v4 = vpack.c.bf16 %v504_v62, %v504_v62 }
 0x2d4   :  { %1603 = vpow2.f32 %v298_v61 }
 0x2d5   :  { %1500 = vmatprep.subr.msk.bf16.mxu1 %vm1798_vm2, %v1498_v4 }
 0x2d6   :  { %v293_v7 = vpop.xlane.xlu0 %292  ;;  %1503 = vmatpush3.bf16.xpose.msk.msra.mxu1 %vm1798_vm2, %v1498_v4 }
 0x2d7   :  { %v297_v9 = vsub.f32 %v279_v39, %v293_v7  ;;  %1506 = vmatprep.subr.msk.bf16.mxu1 %vm1798_vm2, %v1498_v4 }
 0x2d9   :  { %v304_v10 = vmul.f32 1.442695, %v297_v9 }
 0x2da   :  { %v290_v11 = vpop.xlane.xlu0 %289 }
 0x2db   :  { %1605 = vpow2.f32 %v304_v10  ;;  %v296_v12 = vsub.f32 %v274_v41, %v290_v11 }
 0x2dd   :  { %v1602_v13 = vpop.eup %1601  ;;  %v302_v14 = vmul.f32 1.442695, %v296_v12  ;;  %v1667_v12 = vmov 0.0|0.0  }
 0x2de   :  { %v464_v16 = vpop.xlane.xlu0 %463  ;;  %1509 = vmatpush3.bf16.xpose.msk.msra.mxu1 %vm1798_vm2, %v1498_v4  ;;  %v309_v17 = vsel %vm54_vm0, %v1602_v13, 0.0  ;;  %v1604_v18 = vpop.eup %1603  ;;  %1522 = vmatprep.subr.bf16.mxu0 %v1667_v12 }
 0x2df   :  { %1607 = vpow2.f32 %v302_v14  ;;  %v472_v19 = vsub.f32 %v446_v45, %v464_v16  ;;  %310 = vadd.xlane.f32.xlu0 %v309_v17  ;;  %v306_v22 = vsel %vm54_vm0, %v1604_v18, 0.0  ;;  %v42_v14 = vld [vmem:[%s1977_s5 + $0x28] sm:$0xff]  ;;  %v41_v16 = vld [vmem:[%s1977_s5 + $0x20] sm:$0xff] }
 0x2e1   :  { %v477_v20 = vmul.f32 1.442695, %v472_v19 }
 0x2e2   :  { %v461_v21 = vpop.xlane.xlu0 %460 }
 0x2e3   :  { %1609 = vpow2.f32 %v477_v20  ;;  %v471_v23 = vsub.f32 %v441_v47, %v461_v21  ;;  %307 = vadd.xlane.f32.xlu0 %v306_v22 }
 0x2e5   :  { %v1606_v24 = vpop.eup %1605  ;;  %v475_v25 = vmul.f32 1.442695, %v471_v23 }
 0x2e6   :  { %v315_v26 = vsel %vm54_vm0, %v1606_v24, 0.0 }
 0x2e7   :  { %1611 = vpow2.f32 %v475_v25  ;;  %v467_v27 = vpop.xlane.xlu0 %466  ;;  %316 = vadd.xlane.f32.xlu0 %v315_v26 }
 0x2e8   :  { %v473_v28 = vsub.f32 %v451_v52, %v467_v27 }
 0x2e9   :  { %v1608_v29 = vpop.eup %1607 }
 0x2ea   :  { %v479_v30 = vmul.f32 1.442695, %v473_v28  ;;  %v312_v31 = vsel %vm54_vm0, %v1608_v29, 0.0 }
 0x2eb   :  { %v470_v32 = vpop.xlane.xlu0 %469  ;;  %313 = vadd.xlane.f32.xlu0 %v312_v31 }
 0x2ec   :  { %1613 = vpow2.f32 %v479_v30  ;;  %v474_v33 = vsub.f32 %v456_v53, %v470_v32 }
 0x2ed   :  { %v1610_v34 = vpop.eup %1609 }
 0x2ee   :  { %v481_v35 = vmul.f32 1.442695, %v474_v33  ;;  %v486_v36 = vsel %vm54_vm0, %v1610_v34, 0.0 }
 0x2ef   :  { %487 = vadd.xlane.f32.xlu0 %v486_v36 }
 0x2f0   :  { %1615 = vpow2.f32 %v481_v35 }
 0x2f1   :  { %v1612_v37 = vpop.eup %1611 }
 0x2f2   :  { %v483_v38 = vsel %vm54_vm0, %v1612_v37, 0.0 }
 0x2f3   :  { %484 = vadd.xlane.f32.xlu0 %v483_v38 }
 0x2f6   :  { %v1614_v39 = vpop.eup %1613 }
 0x2f7   :  { %v489_v40 = vsel %vm54_vm0, %v1614_v39, 0.0 }
 0x2f8   :  { %490 = vadd.xlane.f32.xlu1 %v489_v40 }
 0x2fa   :  { %v1616_v41 = vpop.eup %1615 }
 0x2fb   :  { %v492_v42 = vsel %vm54_vm0, %v1616_v41, 0.0 }
 0x2fc   :  { %493 = vadd.xlane.f32.xlu0 %v492_v42 }
 0x312   :  { %604 = vrot.lane.b32.xlu0 %v1760_v15, %s1666_s25 }
 0x316   :  { %1592 = vrot.lane.b32.xlu0 %v1591_v3, %s1670_s26 }
 0x31a   :  { %1597 = vrot.lane.b32.xlu0 %v1596_v63, %s1670_s26  ;;  %v1090_v63 = vld [vmem:[%s1975_s3 + $0x8] sm:$0xff] }
 0x36c   :  { %v311_v43 = vpop.xlane.xlu0 %310 }
 0x36d   :  { %1617 = vrcp.f32 %v311_v43 }
 0x370   :  { %v308_v44 = vpop.xlane.xlu0 %307 }
 0x371   :  { %1619 = vrcp.f32 %v308_v44 }
 0x374   :  { %v317_v45 = vpop.xlane.xlu0 %316 }
 0x375   :  { %1621 = vrcp.f32 %v317_v45 }
 0x377   :  { %v1618_v47 = vpop.eup %1617 }
 0x378   :  { %v314_v46 = vpop.xlane.xlu0 %313  ;;  %v323_v51 = vmul.f32 %v1618_v47, %v1602_v13  ;;  %v1669_v13 = vmov 0.0   ;;  %v1273_v47 = vld [vmem:[%s1976_s4 + $0x2] ss:$0 sm:$0xff] }
 0x379   :  { %1623 = vrcp.f32 %v314_v46  ;;  %1419 = vmatprep.mubr.msk.f32.mxu0 %vm1668_vm3, %v1669_v13 }
 0x37b   :  { %v1620_v48 = vpop.eup %1619 }
 0x37c   :  { %v488_v49 = vpop.xlane.xlu0 %487  ;;  %v322_v50 = vmul.f32 %v1620_v48, %v1604_v18 }
 0x37e   :  { %1391 = vmatprep.mubr.msk.f32.mxu1 %vm54_vm0, %v322_v50 }
 0x37f   :  { %1392 = vmatmul.mubr.msk.f32.vlgmr.msra.gmra.mrb[8].mxu1 %vm54_vm0, %v323_v51  ;;  %v1622_v15 = vpop.eup %1621 }
 0x380   :  { %v485_v52 = vpop.xlane.xlu0 %484  ;;  %v325_v55 = vmul.f32 %v1622_v15, %v1606_v24  ;;  %v45_v24 = vld [vmem:[%s1977_s5 + $0x40] sm:$0xff] }
 0x381   :  { %1625 = vrcp.f32 %v485_v52 }
 0x382   :  { %1627 = vrcp.f32 %v488_v49 }
 0x383   :  { %v1624_v53 = vpop.eup %1623 }
 0x384   :  { %v324_v54 = vmul.f32 %v1624_v53, %v1608_v29 }
 0x385   :  { %v491_v61 = vpop.xlane.xlu1 %490 }
 0x386   :  { %1394 = vmatprep.mubr.msk.f32.mxu1 %vm54_vm0, %v324_v54  ;;  %1629 = vrcp.f32 %v491_v61 }
 0x387   :  { %1395 = vmatmul.mubr.msk.f32.gmra.mrb[10].mxu1 %vm54_vm0, %v325_v55 }
 0x389   :  { %v494_v56 = vpop.xlane.xlu0 %493 }
 0x38a   :  { %1631 = vrcp.f32 %v494_v56 }
 0x38b   :  { %v1626_v57 = vpop.eup %1625 }
 0x38c   :  { %v499_v58 = vmul.f32 %v1626_v57, %v1612_v37  ;;  %v1628_v62 = vpop.eup %1627 }
 0x38d   :  { %v605_v59 = vpop.permute.xlu0 %604  ;;  %v500_v7 = vmul.f32 %v1628_v62, %v1610_v34 }
 0x38e   :  { %v1510_v60 = vpack.c.bf16 %v605_v59, %v605_v59  ;;  %1405 = vmatprep.mubr.msk.f32.mxu1 %vm54_vm0, %v499_v58 }
 0x390   :  { %1512 = vmatprep.subr.msk.bf16.mxu1 %vm1798_vm2, %v1510_v60  ;;  %v1630_v4 = vpop.eup %1629 }
 0x391   :  { %1515 = vmatpush3.bf16.xpose.msk.msra.mxu1 %vm1798_vm2, %v1510_v60  ;;  %v501_v10 = vmul.f32 %v1630_v4, %v1614_v39  ;;  %v1593_v26 = vpop.permute.xlu0 %1592  ;;  %v998_v4 = vld [vmem:[%s1974_s2] sm:$0xff] }
 0x392   :  { %1518 = vmatprep.subr.msk.bf16.mxu1 %vm1798_vm2, %v1510_v60  ;;  %v1595_v29 = vunpack.i.h.bf16 %v1593_v26  ;;  %v1594_v30 = vunpack.i.l.bf16 %v1593_v26  ;;  %v1101_v26 = vld [vmem:[%s1975_s3 + $0x60] sm:$0xff] }
 0x394   :  { %v1632_v9 = vpop.eup %1631  ;;  %v1534_v32 = vpack.c.bf16 %v1595_v29, %v1594_v30 }
 0x395   :  { %v502_v11 = vmul.f32 %v1632_v9, %v1616_v41  ;;  %v1598_v35 = vpop.permute.xlu0 %1597 }
 0x396   :  { %v1600_v38 = vunpack.i.h.bf16 %v1598_v35  ;;  %v1599_v39 = vunpack.i.l.bf16 %v1598_v35 }
 0x398   :  { %v1538_v41 = vpack.c.bf16 %v1600_v38, %v1599_v39  ;;  %v1277_v38 = vld [vmem:[%s1976_s4 + $0x5] ss:$0 sm:$0xff] }
 0x399   :  { %1521 = vmatpush3.bf16.xpose.msk.msra.mxu1 %vm1798_vm2, %v1510_v60 }
 0x39a   :  { %1528 = vmatprep.subr.bf16.mxu1 %v1667_v12 }
 0x3a0   :  { %1406 = vmatmul.mubr.msk.f32.vlgmr.msra.gmra.mrb[12].mxu1 %vm54_vm0, %v500_v7  ;;  %v999_v7 = vld [vmem:[%s1974_s2 + $0x8] sm:$0xff] }
 0x3a1   :  { %1408 = vmatprep.mubr.msk.f32.mxu1 %vm54_vm0, %v501_v10  ;;  %v1542_v9 = vpack.c.bf16 %v999_v7, %v998_v4  ;;  %v1000_v10 = vld [vmem:[%s1974_s2 + $0x10] sm:$0xff] }
 0x3a4   :  { %1409 = vmatmul.mubr.msk.f32.gmra.mrb[14].mxu1 %vm54_vm0, %v502_v11  ;;  %v1001_v11 = vld [vmem:[%s1974_s2 + $0x18] sm:$0xff] }
 0x3a5   :  { %1430 = vmatprep.mubr.msk.f32.mxu1 %vm1668_vm3, %v1669_v13  ;;  %v1089_v13 = vld [vmem:[%s1975_s3] sm:$0xff] }
 0x452   :  { %v1393_v17 = vpop.f32.mrb[8].mxu1 }
 0x453   :  { %v706_v18 = vmul.f32 %v1393_v17, %v42_v14  ;;  %v585_v19 = vpop.f32.mrb[9].mxu1  ;;  %v1092_v17 = vld [vmem:[%s1975_s3 + $0x18] sm:$0xff] }
 0x454   :  { %v705_v20 = vmul.f32 %v585_v19, %v41_v16  ;;  %v1093_v19 = vld [vmem:[%s1975_s3 + $0x20] sm:$0xff] }
 0x456   :  { %v1523_v21 = vpack.c.bf16 %v706_v18, %v705_v20  ;;  %v1094_v20 = vld [vmem:[%s1975_s3 + $0x28] sm:$0xff] }
 0x458   :  { %1524 = vmatpush3.bf16.msra.mxu0 %v1523_v21  ;;  %v1558_v21 = vpack.c.bf16 %v1094_v20, %v1093_v19 }
 0x459   :  { %1525 = vmatprep.subr.bf16.mxu0 %v1667_v12 }
 0x45a   :  { %v1396_v2 = vpop.f32.mrb[10].mxu1 }
 0x45b   :  { %v708_v3 = vmul.f32 %v1396_v2, %v44_v0  ;;  %v595_v5 = vpop.f32.mrb[11].mxu1 }
 0x45c   :  { %v707_v22 = vmul.f32 %v595_v5, %v43_v1  ;;  %v1098_v5 = vld [vmem:[%s1975_s3 + $0x48] sm:$0xff] }
 0x45e   :  { %v1526_v23 = vpack.c.bf16 %v708_v3, %v707_v22  ;;  %v1097_v3 = vld [vmem:[%s1975_s3 + $0x40] sm:$0xff] }
 0x45f   :  { %v1566_v22 = vpack.c.bf16 %v1098_v5, %v1097_v3 }
 0x460   :  { %1527 = vmatpush3.bf16.msra.mxu0 %v1526_v23  ;;  %v1099_v23 = vld [vmem:[%s1975_s3 + $0x50] sm:$0xff] }
 0x461   :  { %1535 = vmatprep.subr.bf16.mxu0 %v1534_v32 }
 0x463   :  { %1420 = vmatmul.mubr.msk.f32.vlgmr.msra.gmra.mrb[2].mxu0 %vm54_vm0, %v45_v24 }
 0x464   :  { %1537 = vmatpush3.bf16.msra.mxu0 %v1534_v32 }
 0x465   :  { %1539 = vmatprep.subr.bf16.mxu0 %v1538_v41 }
 0x468   :  { %1541 = vmatpush3.bf16.msra.mxu0 %v1538_v41 }
 0x473   :  { %v1407_v25 = vpop.f32.mrb[12].mxu1 }
 0x474   :  { %v783_v27 = vmul.f32 %v1407_v25, %v42_v14  ;;  %v686_v28 = vpop.f32.mrb[13].mxu1  ;;  %v1091_v14 = vld [vmem:[%s1975_s3 + $0x10] sm:$0xff] }
 0x475   :  { %v782_v31 = vmul.f32 %v686_v28, %v41_v16  ;;  %v1550_v16 = vpack.c.bf16 %v1090_v63, %v1089_v13  ;;  %v1554_v18 = vpack.c.bf16 %v1092_v17, %v1091_v14 }
 0x477   :  { %v1529_v33 = vpack.c.bf16 %v783_v27, %v782_v31  ;;  %v1410_v34 = vpop.f32.mrb[14].mxu1  ;;  %1551 = vmatprep.subr.bf16.mxu0 %v1550_v16  ;;  %v1102_v27 = vld [vmem:[%s1975_s3 + $0x68] sm:$0xff] }
 0x478   :  { %v785_v36 = vmul.f32 %v1410_v34, %v44_v0  ;;  %v696_v37 = vpop.f32.mrb[15].mxu1  ;;  %v1095_v0 = vld [vmem:[%s1975_s3 + $0x30] sm:$0xff]  ;;  %v1574_v28 = vpack.c.bf16 %v1102_v27, %v1101_v26 }
 0x479   :  { %v784_v40 = vmul.f32 %v696_v37, %v43_v1  ;;  %1530 = vmatpush3.bf16.msra.mxu1 %v1529_v33  ;;  %v1096_v1 = vld [vmem:[%s1975_s3 + $0x38] sm:$0xff] }
 0x47a   :  { %1531 = vmatprep.subr.bf16.mxu1 %v1667_v12  ;;  %v1546_v12 = vpack.c.bf16 %v1001_v11, %v1000_v10  ;;  %v1562_v2 = vpack.c.bf16 %v1096_v1, %v1095_v0  ;;  %v1282_v0 = vld [vmem:[%s1976_s4 + $0x6] ss:$0 sm:$0xff] }
 0x47b   :  { %v1532_v42 = vpack.c.bf16 %v785_v36, %v784_v40  ;;  %v1276_v36 = vld [vmem:[%s1976_s4 + $0x4] ss:$0 sm:$0xff] }
 0x47d   :  { %1533 = vmatpush3.bf16.msra.mxu1 %v1532_v42 }
 0x47e   :  { %1543 = vmatprep.subr.bf16.mxu1 %v1542_v9 }
 0x480   :  { %1431 = vmatmul.mubr.msk.f32.vlgmr.msra.gmra.mrb[16].mxu1 %vm54_vm0, %v45_v24  ;;  %v1100_v24 = vld [vmem:[%s1975_s3 + $0x58] sm:$0xff] }
 0x481   :  { %1545 = vmatpush3.bf16.msra.mxu1 %v1542_v9  ;;  %v1570_v25 = vpack.c.bf16 %v1100_v24, %v1099_v23 }
 0x482   :  { %1547 = vmatprep.subr.bf16.mxu1 %v1546_v12 }
 0x485   :  { %1549 = vmatpush3.bf16.msra.mxu1 %v1546_v12 }
 0x536   :  { %v778_v43 = vpop.f32.mrb[2].mxu0 }
 0x537   :  { %v1421_v44 = vpop.f32.mrb[3].mxu0  ;;  %1441 = vmatprep.mubr.msk.f32.mxu0 %vm54_vm0, %v778_v43 }
 0x553   :  { %v852_v45 = vpop.f32.mrb[16].mxu1 }
 0x554   :  { %v1432_v46 = vpop.f32.mrb[17].mxu1  ;;  %1442 = vmatmul.mubr.msk.f32.vlgmr.msra.gmra.mrb[4].mxu0 %vm54_vm0, %v852_v45  ;;  %v1103_v45 = vld [vmem:[%s1975_s3 + $0x70] sm:$0xff] }
 0x555   :  { %1553 = vmatpush3.bf16.msra.mxu0 %v1550_v16  ;;  %v1104_v46 = vld [vmem:[%s1975_s3 + $0x78] sm:$0xff] }
 0x556   :  { %1555 = vmatprep.subr.bf16.mxu0 %v1554_v18 }
 0x559   :  { %1557 = vmatpush3.bf16.msra.mxu0 %v1554_v18 }
 0x55a   :  { %1559 = vmatprep.subr.bf16.mxu0 %v1558_v21 }
 0x55d   :  { %1561 = vmatpush3.bf16.msra.mxu0 %v1558_v21 }
 0x55e   :  { %1563 = vmatprep.subr.bf16.mxu0 %v1562_v2 }
 0x561   :  { %1565 = vmatpush3.bf16.msra.mxu0 %v1562_v2  ;;  %v1283_v2 = vld [vmem:[%s1976_s4 + $0x7] ss:$0 sm:$0xff] }
 0x562   :  { %1567 = vmatprep.subr.bf16.mxu0 %v1566_v22 }
 0x565   :  { %1569 = vmatpush3.bf16.msra.mxu0 %v1566_v22 }
 0x566   :  { %1571 = vmatprep.subr.bf16.mxu0 %v1570_v25 }
 0x569   :  { %1573 = vmatpush3.bf16.msra.mxu0 %v1570_v25 }
 0x56a   :  { %1575 = vmatprep.subr.bf16.mxu0 %v1574_v28 }
 0x56d   :  { %1577 = vmatpush3.bf16.msra.mxu0 %v1574_v28 }
 0x627   :  { %v1443_v48 = vpop.f32.mrb[4].mxu0 }
 0x628   :  { %v954_v49 = vadd.f32 %v1443_v48, %v1273_v47  ;;  %v948_v50 = vpop.f32.mrb[5].mxu0  ;;  %v1278_v48 = vld [vmem:[%s1976_s4] ss:$0 sm:$0xff] }
 0x629   :  { %v949_v51 = vadd.f32 %v1273_v47, %v948_v50  ;;  %v1578_v47 = vpack.c.bf16 %v1104_v46, %v1103_v45 }
 0x62a   :  { %v958_v52 = vadd.f32 %v954_v49, %v1750_v8 }
 0x62b   :  { %v957_v15 = vadd.f32 %v949_v51, %v1741_v6  ;;  %1579 = vmatprep.subr.bf16.mxu0 %v1578_v47 }
 0x62c   :  { %v962_v53 = vsel %vm54_vm0, %v958_v52, 0.0  ;;  %1581 = vmatpush3.bf16.msra.mxu0 %v1578_v47 }
 0x62d   :  { %963 = vadd.xlane.f32.xlu1 %v962_v53  ;;  %v959_v54 = vsel %vm54_vm0, %v957_v15, 0.0 }
 0x62e   :  { %960 = vadd.xlane.f32.xlu0 %v959_v54  ;;  %v1281_v54 = vld [vmem:[%s1976_s4 + $0x3] ss:$0 sm:$0xff] }
 0x6ba   :  { %v964_v55 = vpop.xlane.xlu1 %963 }
 0x6bb   :  { %v967_v56 = vmul.f32 0.03125, %v964_v55  ;;  %v961_v57 = vpop.xlane.xlu0 %960 }
 0x6bc   :  { %v966_v58 = vmul.f32 0.03125, %v961_v57 }
 0x6bd   :  { %v1867_v59 = vsub.f32 %v958_v52, %v967_v56 }
 0x6be   :  { %v968_v60 = vsub.f32 %v957_v15, %v966_v58 }
 0x6bf   :  { %v971_v8 = vmul.f32 %v1867_v59, %v1867_v59 }
 0x6c0   :  { %v970_v61 = vmul.f32 %v968_v60, %v968_v60 }
 0x6c1   :  { %v975_v6 = vsel %vm54_vm0, %v971_v8, 0.0 }
 0x6c2   :  { %v972_v62 = vsel %vm54_vm0, %v970_v61, 0.0 }
 0x6c3   :  { %973 = vadd.xlane.f32.xlu1 %v972_v62 }
 0x6c7   :  { %976 = vadd.xlane.f32.xlu1 %v975_v6 }
 0x750   :  { %v974_v29 = vpop.xlane.xlu1 %973 }
 0x751   :  { %v978_v30 = vmul.f32 0.03125, %v974_v29 }
 0x753   :  { %v980_v31 = vadd.f32 1e-05, %v978_v30 }
 0x754   :  { %v977_v32 = vpop.xlane.xlu1 %976 }
 0x755   :  { %1633 = vrsqrt.f32 %v980_v31  ;;  %v979_v33 = vmul.f32 0.03125, %v977_v32 }
 0x757   :  { %v981_v34 = vadd.f32 1e-05, %v979_v33 }
 0x759   :  { %1635 = vrsqrt.f32 %v981_v34 }
 0x75f   :  { %v1634_v35 = vpop.eup %1633 }
 0x760   :  { %v984_v37 = vmul.f32 %v1634_v35, %v968_v60 }
 0x762   :  { %v990_v39 = vmul.f32 %v1276_v36, %v984_v37 }
 0x763   :  { %v1636_v40 = vpop.eup %1635 }
 0x764   :  { %v985_v41 = vmul.f32 %v1636_v40, %v1867_v59  ;;  %v996_v42 = vadd.f32 %v1277_v38, %v990_v39 }
 0x766   :  { %v991_v43 = vmul.f32 %v1276_v36, %v985_v41  ;;  %1452 = vmatprep.mubr.msk.f32.mxu1 %vm54_vm0, %v996_v42 }
 0x768   :  { %v997_v44 = vadd.f32 %v1277_v38, %v991_v43 }
 0x76a   :  { %1453 = vmatmul.mubr.msk.f32.vlgmr.msra.gmra.mrb[18].mxu1 %vm54_vm0, %v997_v44 }
 0x83d   :  { %v1454_v49 = vpop.f32.mrb[18].mxu1 }
 0x83e   :  { %v1084_v50 = vadd.f32 %v1454_v49, %v1278_v48  ;;  %v1078_v51 = vpop.f32.mrb[19].mxu1 }
 0x83f   :  { %v1079_v52 = vadd.f32 %v1278_v48, %v1078_v51 }
 0x840   :  { %v1088_v53 = vmax.f32 %v1084_v50, 0.0 }
 0x841   :  { %v1087_v15 = vmax.f32 %v1079_v52, 0.0 }
 0x843   :  { %1487 = vmatprep.mubr.f32.mxu0 %v1087_v15 }
 0x844   :  { %1488 = vmatmul.mubr.f32.vlgmr.msra.gmra.mrb[6].mxu0 %v1088_v53 }
 0x917   :  { %v1489_v55 = vpop.f32.mrb[6].mxu0 }
 0x918   :  { %v1175_v56 = vpop.f32.mrb[7].mxu0  ;;  %v1181_v57 = vadd.f32 %v1489_v55, %v1281_v54 }
 0x919   :  { %v1176_v58 = vadd.f32 %v1281_v54, %v1175_v56 }
 0x91a   :  { %v1185_v61 = vadd.f32 %v1181_v57, %v997_v44 }
 0x91b   :  { %v1184_v59 = vadd.f32 %v1176_v58, %v996_v42 }
 0x91c   :  { %v1189_v62 = vsel %vm54_vm0, %v1185_v61, 0.0 }
 0x91d   :  { %v1186_v60 = vsel %vm54_vm0, %v1184_v59, 0.0 }
 0x91e   :  { %1187 = vadd.xlane.f32.xlu1 %v1186_v60 }
 0x922   :  { %1190 = vadd.xlane.f32.xlu1 %v1189_v62 }
 0x9ab   :  { %v1188_v8 = vpop.xlane.xlu1 %1187 }
 0x9ac   :  { %v1192_v6 = vmul.f32 0.03125, %v1188_v8 }
 0x9ae   :  { %v1194_v4 = vsub.f32 %v1184_v59, %v1192_v6 }
 0x9af   :  { %v1191_v7 = vpop.xlane.xlu1 %1190 }
 0x9b0   :  { %v1193_v9 = vmul.f32 0.03125, %v1191_v7  ;;  %v1196_v10 = vmul.f32 %v1194_v4, %v1194_v4 }
 0x9b2   :  { %v1195_v11 = vsub.f32 %v1185_v61, %v1193_v9  ;;  %v1198_v12 = vsel %vm54_vm0, %v1196_v10, 0.0 }
 0x9b3   :  { %1199 = vadd.xlane.f32.xlu1 %v1198_v12 }
 0x9b4   :  { %v1197_v13 = vmul.f32 %v1195_v11, %v1195_v11 }
 0x9b6   :  { %v1201_v63 = vsel %vm54_vm0, %v1197_v13, 0.0 }
 0x9b7   :  { %1202 = vadd.xlane.f32.xlu1 %v1201_v63 }
 0xa40   :  { %v1200_v14 = vpop.xlane.xlu1 %1199 }
 0xa41   :  { %v1204_v16 = vmul.f32 0.03125, %v1200_v14 }
 0xa43   :  { %v1206_v17 = vadd.f32 1e-05, %v1204_v16 }
 0xa44   :  { %v1203_v18 = vpop.xlane.xlu1 %1202 }
 0xa45   :  { %1637 = vrsqrt.f32 %v1206_v17  ;;  %v1205_v19 = vmul.f32 0.03125, %v1203_v18 }
 0xa47   :  { %v1207_v20 = vadd.f32 1e-05, %v1205_v19 }
 0xa49   :  { %1639 = vrsqrt.f32 %v1207_v20 }
 0xa4f   :  { %v1638_v21 = vpop.eup %1637 }
 0xa50   :  { %v1210_v1 = vmul.f32 %v1638_v21, %v1194_v4 }
 0xa52   :  { %v1216_v3 = vmul.f32 %v1282_v0, %v1210_v1 }
 0xa53   :  { %v1640_v5 = vpop.eup %1639 }
 0xa54   :  { %v1211_v22 = vmul.f32 %v1640_v5, %v1195_v11  ;;  %v1222_v23 = vadd.f32 %v1283_v2, %v1216_v3 }
 0xa56   :  { %v1217_v24 = vmul.f32 %v1282_v0, %v1211_v22  ;;  %1224 = vst.msk [vmem:[#allocation2] sm:$0xff] %vm54_vm0, %v1222_v23 }
 0xa58   :  { %v1223_v25 = vadd.f32 %v1283_v2, %v1217_v24 }
 0xa5a   :  { %1225 = vst.msk [vmem:[#allocation2 + $0x8] sm:$0xff] %vm54_vm0, %v1223_v25 }
 0xa5b   :  { %1652 = shalt.err (!%p1649_p4)
}
 0xa5c   :  { %s1653_s13 = scalar_lea.hbm %s1979_s7, 256 }
 0xa5d   :  { %p1654_p5 = scmp.ne.s32.totalorder %s1979_s7, %s1653_s13  ;;  %p1657_p6 = scmp.lt.u32.totalorder %s1653_s13, %s1979_s7 }
 0xa5f   :  { %p1659_p7 = pnand %p1657_p6, %p1654_p5 }
 0xa61   :  { %1662 = shalt.err (!%p1659_p7)
}
 0xa62   :  { %s1672_s17 = smov 128   ;;  %s1673_s6 = smov 8  }
 0xa63   :  { %1237 = dma.vmem_to_hbm [thread:$0]  %s1232_s12, 256, %s1979_s7, [#allocation3], %s1672_s17, %s1672_s17, %s1673_s6  }
 0xa64   :  { %1663 = dma.done.wait [#allocation3], 256  }
 0xa65   :  { %1664 = vsyncadd [#allocation3], 4294967040 }
 0xa66   :  { %1241 = vsyncpa [#allocation3], 1 }

</bundles_post_ra>
